<compile_context>
chip_gen: v6e
topology: v6e:2x2x1
jax: 0.10.0
libtpu: 0.0.40
codegen_flags: <defaults>
</compile_context>

<pallas_src>
import functools

import jax
import jax.numpy as jnp
from jax.experimental import pallas as pl
from jax.experimental.pallas import tpu as pltpu

IMG_SHAPE = (1, 32, 32)
OUT_FEATS = IMG_SHAPE[0] * IMG_SHAPE[1] * IMG_SHAPE[2]   # 1024
LATENT_DIM = 15
IN_FEATS = LATENT_DIM + 2                                # Decoder input width = 17
IN_PAD = 32                                              # 17 padded to a bf16 sublane multiple
ROW_ALIGN = 16                                           # bf16 LHS sublane pack
BN_EPS = 1e-5
LEAK = 0.2


def _leaky_relu(x):
    return jnp.maximum(x, LEAK * x)


def decoder_kernel(z_ref, w12_ref, w3_ref, vecs_ref, img_ref, *, hidden, n_valid):
    """Whole-batch decoder forward.  All refs are fully resident in VMEM.

    z_ref    : (Bp, IN_PAD)            bf16  (rows >= n_valid are zero padding)
    w12_ref  : (IN_PAD + hidden, hidden) bf16  rows [0:IN_PAD]=W1 (zero-padded), rest=W2
    w3_ref   : (hidden, OUT_FEATS)     bf16
    vecs_ref : (8, max(hidden, OUT_FEATS)) f32  rows: b1, b2, gamma, beta, b3
    img_ref  : (Bp, OUT_FEATS)         f32
    """
    z = z_ref[...]                                        # (Bp, IN_PAD) bf16
    w1 = w12_ref[0:IN_PAD, :]                             # (IN_PAD, H)  bf16
    w2 = w12_ref[IN_PAD:IN_PAD + hidden, :]               # (H, H)       bf16

    b1 = vecs_ref[0:1, 0:hidden]                          # (1, H) f32
    b2 = vecs_ref[1:2, 0:hidden]
    gamma = vecs_ref[2:3, 0:hidden]
    beta = vecs_ref[3:4, 0:hidden]
    b3 = vecs_ref[4:5, 0:OUT_FEATS]                       # (1, 1024) f32

    # Linear(17 -> H) + LeakyReLU(0.2)    (bf16 MXU operands, f32 accumulate)
    h = jnp.dot(z, w1, preferred_element_type=jnp.float32) + b1
    h = _leaky_relu(h)

    # Linear(H -> H)
    h = jnp.dot(h.astype(jnp.bfloat16), w2,
                preferred_element_type=jnp.float32) + b2

    # BatchNorm1d(H): training-mode batch statistics (biased variance), affine.
    # Padding rows (>= n_valid) are masked out of the statistics.
    bp = h.shape[0]
    if n_valid == bp:
        mean = jnp.mean(h, axis=0, keepdims=True)
        diff = h - mean
        var = jnp.mean(diff * diff, axis=0, keepdims=True)
    else:
        rows = jax.lax.broadcasted_iota(jnp.int32, (bp, hidden), 0)
        valid = (rows < n_valid).astype(jnp.float32)
        inv_n = 1.0 / float(n_valid)
        mean = jnp.sum(h * valid, axis=0, keepdims=True) * inv_n
        diff = h - mean
        var = jnp.sum(diff * diff * valid, axis=0, keepdims=True) * inv_n
    h = diff * jax.lax.rsqrt(var + BN_EPS) * gamma + beta

    h = _leaky_relu(h)

    # Linear(H -> 1024) + Tanh, lane-dense (Bp, 1024) output slab.
    o = jnp.dot(h.astype(jnp.bfloat16), w3_ref[...],
                preferred_element_type=jnp.float32) + b3
    img_ref[...] = jnp.tanh(o)


def _vmem_limit_bytes(bp, hidden):
    """Size-derived scoped-VMEM budget (portable across v5e/v6e/v7x)."""
    wmax = max(hidden, OUT_FEATS)
    in_bytes = (bp * IN_PAD * 2                  # z (bf16)
                + (IN_PAD + hidden) * hidden * 2  # packed W1|W2 (bf16)
                + hidden * OUT_FEATS * 2          # W3 (bf16)
                + 8 * wmax * 4)                   # packed bias/affine vectors (f32)
    out_bytes = bp * OUT_FEATS * 4
    act_bytes = 4 * bp * wmax * 4                 # f32 intermediates headroom
    total = 2 * (in_bytes + out_bytes) + act_bytes + (2 << 20)
    # floor at 4 MiB, cap below v7x's 64 MiB physical VMEM
    return int(min(max(total, 4 << 20), 56 << 20))


def prepare_params(params):
    """One-time parameter packing/casting (hoisted out of the per-call path).

    Weights are expected as (in_features, out_features) so the kernel computes
    x @ W + b.  NOTE: real PyTorch nn.Linear checkpoints store (out, in) and
    must be transposed here at prep time.
    """
    w1, b1, w2, b2, gamma, beta, w3, b3 = params
    hidden = w2.shape[0]

    w1_pad = jnp.pad(w1.astype(jnp.float32),
                     ((0, IN_PAD - w1.shape[0]), (0, 0)))
    w12 = jnp.concatenate([w1_pad, w2.astype(jnp.float32)],
                          axis=0).astype(jnp.bfloat16)        # (IN_PAD+H, H)
    w3_bf = w3.astype(jnp.bfloat16)                           # (H, 1024)

    wmax = max(hidden, OUT_FEATS)
    vecs = jnp.zeros((8, wmax), jnp.float32)
    vecs = vecs.at[0, :hidden].set(b1.reshape(-1).astype(jnp.float32))
    vecs = vecs.at[1, :hidden].set(b2.reshape(-1).astype(jnp.float32))
    vecs = vecs.at[2, :hidden].set(gamma.reshape(-1).astype(jnp.float32))
    vecs = vecs.at[3, :hidden].set(beta.reshape(-1).astype(jnp.float32))
    vecs = vecs.at[4, :OUT_FEATS].set(b3.reshape(-1).astype(jnp.float32))
    return (w12, w3_bf, vecs)


def decoder_forward(z, prepped):
    """z: (B, latent_dim + 2) f32.  prepped: prepare_params(...).  -> (B, 1, 32, 32) f32."""
    w12, w3, vecs = prepped
    b, in_feats = z.shape
    hidden = w3.shape[0]

    # Pad batch to a multiple of 16 (bf16 LHS sublane pack / unmasked f32 stores).
    bp = max(ROW_ALIGN, -(-b // ROW_ALIGN) * ROW_ALIGN)
    z_p = jnp.pad(z.astype(jnp.bfloat16), ((0, bp - b), (0, IN_PAD - in_feats)))

    kernel = functools.partial(decoder_kernel, hidden=hidden, n_valid=b)
    vmem = pltpu.MemorySpace.VMEM
    img_flat = pl.pallas_call(
        kernel,
        out_shape=jax.ShapeDtypeStruct((bp, OUT_FEATS), jnp.float32),
        in_specs=[pl.BlockSpec(memory_space=vmem)] * 4,
        out_specs=pl.BlockSpec(memory_space=vmem),
        compiler_params=pltpu.CompilerParams(
            vmem_limit_bytes=_vmem_limit_bytes(bp, hidden)),
    )(z_p, w12, w3, vecs)

    # Drop batch padding; NCHW reshape (img_flat.view) is free glue.
    return img_flat[:b].reshape(b, *IMG_SHAPE)


def decoder_reference(z, params):
    """Pure-JAX f32 reference of the PyTorch forward (training-mode BN)."""
    w1, b1, w2, b2, gamma, beta, w3, b3 = params
    h = _leaky_relu(z @ w1 + b1)
    h = h @ w2 + b2
    mean = jnp.mean(h, axis=0, keepdims=True)
    var = jnp.mean((h - mean) ** 2, axis=0, keepdims=True)
    h = (h - mean) * jax.lax.rsqrt(var + BN_EPS) * gamma + beta
    h = _leaky_relu(h)
    o = jnp.tanh(h @ w3 + b3)
    return o.reshape(z.shape[0], *IMG_SHAPE)


def init_params(key, model_size):
    """Deterministic synthetic weights matching the nn.Module shapes,
    stored as (in_features, out_features) for x @ W + b."""
    ks = jax.random.split(key, 5)
    h = model_size
    w1 = jax.random.normal(ks[0], (IN_FEATS, h), jnp.float32) * 0.05
    b1 = jnp.zeros((1, h), jnp.float32)
    w2 = jax.random.normal(ks[1], (h, h), jnp.float32) * 0.05
    b2 = jax.random.normal(ks[2], (1, h), jnp.float32) * 0.01
    gamma = jnp.ones((1, h), jnp.float32)
    beta = jnp.zeros((1, h), jnp.float32)
    w3 = jax.random.normal(ks[3], (h, OUT_FEATS), jnp.float32) * 0.05
    b3 = jax.random.normal(ks[4], (1, OUT_FEATS), jnp.float32) * 0.01
    return (w1, b1, w2, b2, gamma, beta, w3, b3)


if __name__ == "__main__":
    key = jax.random.PRNGKey(0)
    k_z, k_param = jax.random.split(key, 2)

    B = 2                 # batch
    MODEL_SIZE = 32       # hidden width (model_size ctor arg)

    z = jax.random.normal(k_z, (B, IN_FEATS), jnp.float32)   # (2, 17)
    params = init_params(k_param, MODEL_SIZE)

    prepped = prepare_params(params)          # one-time packing, off the hot path
    fwd = jax.jit(decoder_forward)

    img = fwd(z, prepped)
    jax.block_until_ready(img)

    assert img.shape == (B,) + IMG_SHAPE

    # Loose-tolerance check vs the f32 reference (bf16 MXU operands deviate slightly).
    ref = decoder_reference(z, params)
    max_err = float(jnp.max(jnp.abs(img - ref)))
    assert max_err < 0.1, f"max abs err vs f32 reference too large: {max_err}"

    print("KERNEL_OK")
</pallas_src>

<mosaic_0001>
module attributes {stable_mosaic.version = 11 : i64} {
  func.func @decoder_kernel(%arg0: memref<16x32xbf16, #tpu.memory_space<vmem>>, %arg1: memref<64x32xbf16, #tpu.memory_space<vmem>>, %arg2: memref<32x1024xbf16, #tpu.memory_space<vmem>>, %arg3: memref<8x1024xf32, #tpu.memory_space<vmem>>, %arg4: memref<16x1024xf32, #tpu.memory_space<vmem>>) attributes {dimension_semantics = [], scalar_prefetch = 0 : i64, scratch_operands = 0 : i64, tpu.core_type = #tpu.core_type<tc>} {
    %c0 = arith.constant 0 : index
    %c0_0 = arith.constant 0 : index
    %0 = vector.load %arg0[%c0, %c0_0] : memref<16x32xbf16, #tpu.memory_space<vmem>>, vector<16x32xbf16>
    %c0_1 = arith.constant 0 : index
    %c0_2 = arith.constant 0 : index
    %1 = vector.load %arg1[%c0_1, %c0_2] : memref<64x32xbf16, #tpu.memory_space<vmem>>, vector<32x32xbf16>
    %c32 = arith.constant 32 : index
    %c0_3 = arith.constant 0 : index
    %2 = vector.load %arg1[%c32, %c0_3] : memref<64x32xbf16, #tpu.memory_space<vmem>>, vector<32x32xbf16>
    %c0_4 = arith.constant 0 : index
    %c0_5 = arith.constant 0 : index
    %3 = vector.load %arg3[%c0_4, %c0_5] : memref<8x1024xf32, #tpu.memory_space<vmem>>, vector<1x32xf32>
    %c1 = arith.constant 1 : index
    %c0_6 = arith.constant 0 : index
    %4 = vector.load %arg3[%c1, %c0_6] : memref<8x1024xf32, #tpu.memory_space<vmem>>, vector<1x32xf32>
    %c2 = arith.constant 2 : index
    %c0_7 = arith.constant 0 : index
    %5 = vector.load %arg3[%c2, %c0_7] : memref<8x1024xf32, #tpu.memory_space<vmem>>, vector<1x32xf32>
    %c3 = arith.constant 3 : index
    %c0_8 = arith.constant 0 : index
    %6 = vector.load %arg3[%c3, %c0_8] : memref<8x1024xf32, #tpu.memory_space<vmem>>, vector<1x32xf32>
    %c4 = arith.constant 4 : index
    %c0_9 = arith.constant 0 : index
    %7 = vector.load %arg3[%c4, %c0_9] : memref<8x1024xf32, #tpu.memory_space<vmem>>, vector<1x1024xf32>
    %cst = arith.constant dense<0.000000e+00> : vector<16x32xf32>
    %8 = tpu.matmul %0, %1, %cst {dimension_numbers = #tpu.dot_dimension_numbers<[1], [0], [0], [1], [0, 0, 1, 1], [], []>} : vector<16x32xbf16>, vector<32x32xbf16>, vector<16x32xf32> -> vector<16x32xf32>
    %9 = vector.broadcast %3 : vector<1x32xf32> to vector<16x32xf32>
    %10 = arith.addf %8, %9 : vector<16x32xf32>
    %cst_10 = arith.constant 2.000000e-01 : f32
    %11 = vector.broadcast %cst_10 : f32 to vector<16x32xf32>
    %12 = arith.mulf %11, %10 : vector<16x32xf32>
    %13 = arith.maximumf %10, %12 : vector<16x32xf32>
    %14 = arith.truncf %13 : vector<16x32xf32> to vector<16x32xbf16>
    %cst_11 = arith.constant dense<0.000000e+00> : vector<16x32xf32>
    %15 = tpu.matmul %14, %2, %cst_11 {dimension_numbers = #tpu.dot_dimension_numbers<[1], [0], [0], [1], [0, 0, 1, 1], [], []>} : vector<16x32xbf16>, vector<32x32xbf16>, vector<16x32xf32> -> vector<16x32xf32>
    %16 = vector.broadcast %4 : vector<1x32xf32> to vector<16x32xf32>
    %17 = arith.addf %15, %16 : vector<16x32xf32>
    %18 = tpu.iota {dimensions = array<i32: 0>} : vector<16x32xi32>
    %c2_i32 = arith.constant 2 : i32
    %19 = vector.broadcast %c2_i32 : i32 to vector<16x32xi32>
    %20 = arith.cmpi slt, %18, %19 : vector<16x32xi32>
    %21 = arith.extui %20 : vector<16x32xi1> to vector<16x32xi32>
    %22 = arith.sitofp %21 : vector<16x32xi32> to vector<16x32xf32>
    %23 = arith.mulf %17, %22 : vector<16x32xf32>
    %cst_12 = arith.constant dense<0.000000e+00> : vector<32xf32>
    %24 = vector.multi_reduction <add>, %23, %cst_12 [0] : vector<16x32xf32> to vector<32xf32>
    %25 = vector.shape_cast %24 : vector<32xf32> to vector<1x32xf32>
    %cst_13 = arith.constant 5.000000e-01 : f32
    %26 = vector.broadcast %cst_13 : f32 to vector<1x32xf32>
    %27 = arith.mulf %25, %26 : vector<1x32xf32>
    %28 = vector.broadcast %27 : vector<1x32xf32> to vector<16x32xf32>
    %29 = arith.subf %17, %28 : vector<16x32xf32>
    %30 = arith.mulf %29, %29 : vector<16x32xf32>
    %31 = arith.mulf %30, %22 : vector<16x32xf32>
    %cst_14 = arith.constant dense<0.000000e+00> : vector<32xf32>
    %32 = vector.multi_reduction <add>, %31, %cst_14 [0] : vector<16x32xf32> to vector<32xf32>
    %33 = vector.shape_cast %32 : vector<32xf32> to vector<1x32xf32>
    %cst_15 = arith.constant 5.000000e-01 : f32
    %34 = vector.broadcast %cst_15 : f32 to vector<1x32xf32>
    %35 = arith.mulf %33, %34 : vector<1x32xf32>
    %cst_16 = arith.constant 9.99999974E-6 : f32
    %36 = vector.broadcast %cst_16 : f32 to vector<1x32xf32>
    %37 = arith.addf %35, %36 : vector<1x32xf32>
    %38 = math.rsqrt %37 : vector<1x32xf32>
    %39 = vector.broadcast %38 : vector<1x32xf32> to vector<16x32xf32>
    %40 = arith.mulf %29, %39 : vector<16x32xf32>
    %41 = vector.broadcast %5 : vector<1x32xf32> to vector<16x32xf32>
    %42 = arith.mulf %40, %41 : vector<16x32xf32>
    %43 = vector.broadcast %6 : vector<1x32xf32> to vector<16x32xf32>
    %44 = arith.addf %42, %43 : vector<16x32xf32>
    %cst_17 = arith.constant 2.000000e-01 : f32
    %45 = vector.broadcast %cst_17 : f32 to vector<16x32xf32>
    %46 = arith.mulf %45, %44 : vector<16x32xf32>
    %47 = arith.maximumf %44, %46 : vector<16x32xf32>
    %48 = arith.truncf %47 : vector<16x32xf32> to vector<16x32xbf16>
    %c0_18 = arith.constant 0 : index
    %c0_19 = arith.constant 0 : index
    %49 = vector.load %arg2[%c0_18, %c0_19] : memref<32x1024xbf16, #tpu.memory_space<vmem>>, vector<32x1024xbf16>
    %cst_20 = arith.constant dense<0.000000e+00> : vector<16x1024xf32>
    %50 = tpu.matmul %48, %49, %cst_20 {dimension_numbers = #tpu.dot_dimension_numbers<[1], [0], [0], [1], [0, 0, 1, 1], [], []>} : vector<16x32xbf16>, vector<32x1024xbf16>, vector<16x1024xf32> -> vector<16x1024xf32>
    %51 = vector.broadcast %7 : vector<1x1024xf32> to vector<16x1024xf32>
    %52 = arith.addf %50, %51 : vector<16x1024xf32>
    %53 = math.tanh %52 : vector<16x1024xf32>
    %c0_21 = arith.constant 0 : index
    %c0_22 = arith.constant 0 : index
    %54 = vector.load %arg4[%c0_21, %c0_22] : memref<16x1024xf32, #tpu.memory_space<vmem>>, vector<16x1024xf32>
    tpu.vector_store %arg4[%c0_21, %c0_22], %53 {strides = array<i32>} : memref<16x1024xf32, #tpu.memory_space<vmem>>, vector<16x1024xf32>,
    return
  }
}

</mosaic_0001>

<bundles_post_ra>
// kernel: decoder_forward.1
= control target key start
LH: loop header
LB: loop body
LE: loop exit
PB: predicated region body
PF: predicated region fallthrough
CT: control target
= control target key end

     0   :  { %9 = vsyncpa [#allocation3], 0  ;;  %s691_s15 = smov [#allocation2]   ;;  %s860_s0 = inlined_call_operand.vmem [shape: bf16[16,32], index: 0, kind: input, shape index: {}]   ;;  %s861_s1 = inlined_call_operand.vmem [shape: bf16[64,32], index: 1, kind: input, shape index: {}]   ;;  %s862_s2 = inlined_call_operand.hbm [shape: bf16[32,1024], index: 2, kind: input, shape index: {}]   ;;  %s863_s3 = inlined_call_operand.vmem [shape: f32[8,1024], index: 3, kind: input, shape index: {}]   ;;  %s864_s4 = inlined_call_operand.vmem [shape: f32[16,1024], index: 4, kind: output, shape index: {}]  }
   0x1   :  { %s19_s16 = sshll.u32 %s691_s15, 4  ;;  %s20_s16 = int_to_ptr.vmem [resolvable:$true] %s19_s16 }
   0x2   :  { %s677_s17 = scalar_lea.vmem %s20_s16, 2048  ;;  %p682_p1 = scmp.lt.s32.totalorder %s20_s16, %s20_s16 }
   0x3   :  { %p678_p0 = scmp.ne.s32.totalorder %s20_s16, %s677_s17  ;;  %p683_p2 = scmp.lt.s32.totalorder %s677_s17, %s677_s17 }
   0x5   :  { %p684_p3 = por %p683_p2, %p682_p1 }
   0x7   :  { %p685_p4 = pnand %p684_p3, %p678_p0 }
   0x9   :  { %688 = shalt.err (!%p685_p4)
}
   0xa   :  { %s692_s18 = smov 512   ;;  %s693_s19 = smov 32  }
   0xb   :  { %25 = dma.hbm_to_vmem [thread:$0]  %s862_s2, 2048, %s20_s16, [#allocation3], %s692_s18, %s692_s18, %s693_s19  }
   0xc   :  { %689 = dma.done.wait [#allocation3], 2048  }
   0xd   :  { %690 = vsyncadd [#allocation3], 4294965248  ;;  %v694_v0 = vmov 0.0   ;;  %vm695_vm0 = vmmov 0   ;;  %v630_v1 = vld [vmem:[%s861_s1 + $0x8] sm:$0xff]   ;;  %v631_v2 = vld [vmem:[%s861_s1] sm:$0xff]   ;;  %v173_v43 = vlaneseq }
   0xe   :  { %608 = vmatprep.subr.bf16.mxu0 %v694_v0  ;;  %612 = vmatprep.mubr.msk.bf16.mxu0 %vm695_vm0, %v694_v0  ;;  %v632_v3 = vld [vmem:[%s860_s0] sm:$0xff]   ;;  %vm67_vm1 = vcmask 261120   ;;  %v633_v4 = vld [vmem:[%s861_s1 + $0x18] sm:$0xff]   ;;  %v634_v5 = vld [vmem:[%s861_s1 + $0x10] sm:$0xff]   ;;  %v696_v40 = vmov 0  }
   0xf   :  { %616 = vmatprep.subr.bf16.mxu1 %v694_v0  ;;  %620 = vmatprep.mubr.msk.bf16.mxu1 %vm695_vm0, %v694_v0  ;;  %v42_v6 = vld [vmem:[%s863_s3] ss:$0 sm:$0xff]  ;;  %v232_v20 = vld [vmem:[#allocation2 + $0x48] sm:$0xff]  ;;  %v751_v34 = vld [vmem:[#allocation2 + $0x50] sm:$0xff]  ;;  %v769_v44 = vshrl.u32 %v173_v43, 7 }
  0x10   :  { %609 = vmatpush3.bf16.msra.mxu0 %v630_v1  ;;  %617 = vmatpush3.bf16.msra.mxu1 %v633_v4  ;;  %v231_v18 = vld [vmem:[#allocation2 + $0x40] sm:$0xff]  ;;  %v236_v22 = vld [vmem:[#allocation2 + $0x68] sm:$0xff]  ;;  %v753_v35 = vld [vmem:[#allocation2 + $0x70] sm:$0xff] }
  0x11   :  { %610 = vmatprep.subr.bf16.mxu0 %v694_v0  ;;  %618 = vmatprep.subr.bf16.mxu1 %v694_v0  ;;  %v235_v19 = vld [vmem:[#allocation2 + $0x60] sm:$0xff]  ;;  %v592_v24 = vcombine.low %v232_v20, %v236_v22  ;;  %v593_v25 = vcombine.high %v232_v20, %v236_v22  ;;  %v224_v28 = vld [vmem:[#allocation2 + $0x8] sm:$0xff]  ;;  %v755_v36 = vld [vmem:[#allocation2 + $0x58] sm:$0xff]  ;;  %v594_v37 = vcombine.low %v751_v34, %v753_v35  ;;  %vm176_vm2 = vcmp.lt.s32.totalorder %v769_v44, 2 }
  0x12   :  { %v591_v21 = vcombine.high %v231_v18, %v235_v19  ;;  %v590_v23 = vcombine.low %v231_v18, %v235_v19  ;;  %v223_v26 = vld [vmem:[#allocation2] sm:$0xff]  ;;  %v228_v30 = vld [vmem:[#allocation2 + $0x28] sm:$0xff]  ;;  %v595_v38 = vcombine.high %v751_v34, %v753_v35  ;;  %v761_v39 = vld [vmem:[#allocation2 + $0x78] sm:$0xff]  ;;  %v581_v48 = vsel %vm176_vm2, 1.0, %v694_v0 }
  0x13   :  { %v227_v27 = vld [vmem:[#allocation2 + $0x20] sm:$0xff]  ;;  %v584_v32 = vcombine.low %v224_v28, %v228_v30  ;;  %v585_v33 = vcombine.high %v224_v28, %v228_v30  ;;  %v596_v41 = vcombine.low %v755_v36, %v761_v39  ;;  %v597_v42 = vcombine.high %v755_v36, %v761_v39  ;;  %v229_v30 = vld [vmem:[#allocation2 + $0x30] sm:$0xff] }
  0x14   :  { %611 = vmatpush3.bf16.msra.mxu0 %v631_v2  ;;  %619 = vmatpush3.bf16.msra.mxu1 %v634_v5  ;;  %v583_v29 = vcombine.high %v223_v26, %v227_v27  ;;  %v582_v31 = vcombine.low %v223_v26, %v227_v27  ;;  %v43_v45 = vld [vmem:[%s863_s3 + $0x1] ss:$0 sm:$0xff]  ;;  %v44_v19 = vld [vmem:[%s863_s3 + $0x2] ss:$0 sm:$0xff]  ;;  %v45_v22 = vld [vmem:[%s863_s3 + $0x3] ss:$0 sm:$0xff] }
  0x15   :  { %375 = vmatprep.subr.bf16.mxu0 %v591_v21  ;;  %418 = vmatprep.subr.bf16.mxu1 %v593_v25  ;;  %v572_v34 = vld [vmem:[%s863_s3 + $0x4] ss:$8 sm:$0xf]  ;;  %v250_v39 = vsub.s32 2, %v769_v44 }
  0x16   :  { %v573_v35 = vld [vmem:[%s863_s3 + $0x4] ss:$8 sm:$0xf0] }
  0x17   :  { %613 = vmatmul.mubr.msk.bf16.vlgmr.msra.gmra.mxu0 %vm67_vm1, %v632_v3  ;;  %v49_v36 = vor.u32 %v573_v35, %v572_v34 }
  0x18   :  { %376 = vmatpush1.bf16.msra.mxu0 %v590_v23  ;;  %395 = vmatprep.mubr.bf16.mxu0 %v696_v40 }
  0x19   :  { %377 = vmatprep.subr.bf16.mxu0 %v583_v29  ;;  %v225_v29 = vld [vmem:[#allocation2 + $0x10] sm:$0xff] }
  0x1a   :  { %v587_v43 = vcombine.high %v225_v29, %v229_v30 }
  0x1c   :  { %378 = vmatpush1.bf16.msra.mxu0 %v582_v31  ;;  %v226_v31 = vld [vmem:[#allocation2 + $0x18] sm:$0xff] }
  0x1d   :  { %461 = vmatprep.subr.bf16.mxu0 %v595_v38 }
  0xd7   :  { %v105_v7 = vpop.f32.mrf.mxu0 }
  0xd8   :  { %v106_v8 = vadd.f32 %v105_v7, %v42_v6 }
  0xd9   :  { %v614_v9 = vpop.f32.mrf.mxu0 }
  0xda   :  { %v112_v11 = vmul.f32 0.2, %v106_v8 }
  0xdb   :  { %v108_v10 = vpop.f32.mrf.mxu0 }
  0xdc   :  { %v109_v12 = vadd.f32 %v108_v10, %v42_v6  ;;  %v114_v15 = vmax.f32 %v106_v8, %v112_v11 }
  0xdd   :  { %v615_v13 = vpop.f32.mrf.mxu0 }
  0xde   :  { %v113_v14 = vmul.f32 0.2, %v109_v12 }
  0xe0   :  { %v115_v16 = vmax.f32 %v109_v12, %v113_v14 }
  0xe2   :  { %v116_v17 = vpack.c.bf16 %v115_v16, %v114_v15 }
  0xe4   :  { %621 = vmatmul.mubr.msk.bf16.vlgmr.msra.gmra.mxu1 %vm67_vm1, %v116_v17 }
  0xe5   :  { %419 = vmatpush1.bf16.msra.mxu1 %v592_v24  ;;  %438 = vmatprep.mubr.bf16.mxu1 %v696_v40 }
  0xe6   :  { %420 = vmatprep.subr.bf16.mxu1 %v585_v33 }
  0xe9   :  { %421 = vmatpush1.bf16.msra.mxu1 %v584_v32  ;;  %v230_v32 = vld [vmem:[#allocation2 + $0x38] sm:$0xff] }
  0xea   :  { %504 = vmatprep.subr.bf16.mxu1 %v597_v42 }
 0x1a4   :  { %v166_v46 = vpop.f32.mrf.mxu1 }
 0x1a5   :  { %v167_v47 = vadd.f32 %v166_v46, %v43_v45  ;;  %v586_v46 = vcombine.low %v225_v29, %v229_v30 }
 0x1a6   :  { %v622_v49 = vpop.f32.mrf.mxu1 }
 0x1a7   :  { %v182_v51 = vmul.f32 %v581_v48, %v167_v47  ;;  %v251_v49 = vrot.slane %v49_v36, %v250_v39 }
 0x1a8   :  { %v169_v50 = vpop.f32.mrf.mxu1 }
 0x1a9   :  { %v170_v52 = vadd.f32 %v169_v50, %v43_v45  ;;  %v184_v55 = vsel %vm67_vm1, %v182_v51, 0.0  ;;  %v589_v45 = vcombine.high %v226_v31, %v230_v32 }
 0x1aa   :  { %v623_v53 = vpop.f32.mrf.mxu1 }
 0x1ab   :  { %v183_v54 = vmul.f32 0.0, %v170_v52 }
 0x1ad   :  { %v185_v56 = vsel %vm67_vm1, %v183_v54, 0.0  ;;  %v258_v54 = vsub.s32 4, %v769_v44 }
 0x1ae   :  { %v186_v57 = vadd.f32 %v185_v56, %v184_v55 }
 0x1b0   :  { %v187_v58 = vrot.slane %v186_v57, 4 }
 0x1b2   :  { %v188_v59 = vadd.f32 %v187_v58, %v186_v57  ;;  %v266_v57 = vsub.s32 6, %v769_v44 }
 0x1b4   :  { %v189_v60 = vrot.slane %v188_v59, 2 }
 0x1b6   :  { %v190_v61 = vadd.f32 %v189_v60, %v188_v59  ;;  %v262_v60 = vsub.s32 5, %v769_v44 }
 0x1b8   :  { %v191_v62 = vrot.slane %v190_v61, 1 }
 0x1ba   :  { %v192_v63 = vadd.f32 %v191_v62, %v190_v61 }
 0x1bc   :  { %v193_v1 = vmul.f32 0.5, %v192_v63  ;;  %v270_v63 = vsub.s32 7, %v769_v44 }
 0x1be   :  { %v194_v2 = vsub.f32 %v167_v47, %v193_v1  ;;  %v195_v0 = vsub.f32 %v170_v52, %v193_v1  ;;  %v588_v47 = vcombine.low %v226_v31, %v230_v32 }
 0x1c0   :  { %v196_v3 = vmul.f32 %v194_v2, %v194_v2  ;;  %v197_v4 = vmul.f32 %v195_v0, %v195_v0 }
 0x1c2   :  { %v198_v5 = vmul.f32 %v581_v48, %v196_v3  ;;  %v199_v6 = vmul.f32 0.0, %v197_v4 }
 0x1c4   :  { %v200_v7 = vsel %vm67_vm1, %v198_v5, 0.0  ;;  %v201_v8 = vsel %vm67_vm1, %v199_v6, 0.0  ;;  %v267_v5 = vrot.slane %v49_v36, %v266_v57 }
 0x1c5   :  { %v202_v9 = vadd.f32 %v201_v8, %v200_v7  ;;  %v263_v8 = vrot.slane %v49_v36, %v262_v60 }
 0x1c7   :  { %v203_v10 = vrot.slane %v202_v9, 4 }
 0x1c9   :  { %v204_v11 = vadd.f32 %v203_v10, %v202_v9 }
 0x1cb   :  { %v205_v12 = vrot.slane %v204_v11, 2 }
 0x1cd   :  { %v206_v13 = vadd.f32 %v205_v12, %v204_v11  ;;  %v271_v11 = vrot.slane %v49_v36, %v270_v63 }
 0x1cf   :  { %v207_v14 = vrot.slane %v206_v13, 1 }
 0x1d1   :  { %v208_v15 = vadd.f32 %v207_v14, %v206_v13 }
 0x1d3   :  { %v209_v16 = vmul.f32 0.5, %v208_v15 }
 0x1d5   :  { %v210_v17 = vadd.f32 1e-05, %v209_v16 }
 0x1d7   :  { %635 = vrsqrt.f32 %v210_v17 }
 0x1e4   :  { %v636_v18 = vpop.eup %635 }
 0x1e5   :  { %v212_v20 = vmul.f32 %v636_v18, %v194_v2  ;;  %v213_v21 = vmul.f32 %v636_v18, %v195_v0  ;;  %v259_v0 = vrot.slane %v49_v36, %v258_v54 }
 0x1e7   :  { %v214_v23 = vmul.f32 %v212_v20, %v44_v19  ;;  %v215_v24 = vmul.f32 %v213_v21, %v44_v19 }
 0x1e9   :  { %v216_v25 = vadd.f32 %v214_v23, %v45_v22  ;;  %v217_v26 = vadd.f32 %v215_v24, %v45_v22 }
 0x1eb   :  { %v218_v27 = vmul.f32 0.2, %v216_v25  ;;  %v219_v28 = vmul.f32 0.2, %v217_v26 }
 0x1ed   :  { %v220_v33 = vmax.f32 %v216_v25, %v218_v27  ;;  %v221_v38 = vmax.f32 %v217_v26, %v219_v28 }
 0x1ef   :  { %v222_v42 = vpack.c.bf16 %v221_v38, %v220_v33 }
 0x1f1   :  { %598 = vmatmul.mubr.msk.bf16.vlgmr.msra.gmra.mxu0 %vm67_vm1, %v222_v42  ;;  %599 = vmatmul.mubr.msk.bf16.vlgmr.msra.gmra.mxu1 %vm67_vm1, %v222_v42 }
 0x1f2   :  { %462 = vmatpush1.bf16.msra.mxu0 %v594_v37  ;;  %505 = vmatpush1.bf16.msra.mxu1 %v596_v41  ;;  %v242_v37 = vsub.s32 0, %v769_v44  ;;  %v254_v41 = vsub.s32 3, %v769_v44 }
 0x1f3   :  { %463 = vmatprep.subr.bf16.mxu0 %v587_v43  ;;  %506 = vmatprep.subr.bf16.mxu1 %v589_v45 }
 0x1f4   :  { %481 = vmatprep.mubr.bf16.mxu0 %v696_v40  ;;  %524 = vmatprep.mubr.bf16.mxu1 %v696_v40  ;;  %v246_v40 = vsub.s32 1, %v769_v44  ;;  %v243_v48 = vrot.slane %v49_v36, %v242_v37  ;;  %v255_v51 = vrot.slane %v49_v36, %v254_v41 }
 0x1f6   :  { %464 = vmatpush1.bf16.msra.mxu0 %v586_v46  ;;  %507 = vmatpush1.bf16.msra.mxu1 %v588_v47  ;;  %v247_v50 = vrot.slane %v49_v36, %v246_v40 }
 0x1f9   :  { %600 = vmatmul.mubr.msk.bf16.vlgmr.msra.gmra.mxu0 %vm67_vm1, %v222_v42  ;;  %601 = vmatmul.mubr.msk.bf16.vlgmr.msra.gmra.mxu1 %vm67_vm1, %v222_v42 }
 0x2b1   :  { %v397_v52 = vpop.f32.mrf.mxu0  ;;  %v440_v53 = vpop.f32.mrf.mxu1 }
 0x2b2   :  { %v398_v55 = vadd.f32 %v397_v52, %v243_v48  ;;  %v441_v56 = vadd.f32 %v440_v53, %v251_v49 }
 0x2b3   :  { %v399_v58 = vpop.f32.mrf.mxu0  ;;  %v442_v59 = vpop.f32.mrf.mxu1 }
 0x2b4   :  { %637 = vtanh.f32 %v398_v55  ;;  %v400_v61 = vadd.f32 %v399_v58, %v247_v50  ;;  %v443_v62 = vadd.f32 %v442_v59, %v255_v51 }
 0x2b5   :  { %639 = vtanh.f32 %v441_v56  ;;  %v401_v1 = vpop.f32.mrf.mxu0  ;;  %v444_v2 = vpop.f32.mrf.mxu1 }
 0x2b6   :  { %641 = vtanh.f32 %v400_v61  ;;  %v402_v3 = vadd.f32 %v401_v1, %v243_v48  ;;  %v445_v4 = vadd.f32 %v444_v2, %v251_v49 }
 0x2b7   :  { %643 = vtanh.f32 %v443_v62  ;;  %v403_v6 = vpop.f32.mrf.mxu0  ;;  %v446_v7 = vpop.f32.mrf.mxu1 }
 0x2b8   :  { %645 = vtanh.f32 %v402_v3  ;;  %v404_v9 = vadd.f32 %v403_v6, %v247_v50  ;;  %v447_v10 = vadd.f32 %v446_v7, %v255_v51 }
 0x2b9   :  { %647 = vtanh.f32 %v445_v4  ;;  %v483_v12 = vpop.f32.mrf.mxu0  ;;  %v526_v13 = vpop.f32.mrf.mxu1 }
 0x2ba   :  { %649 = vtanh.f32 %v404_v9  ;;  %v484_v44 = vadd.f32 %v483_v12, %v259_v0  ;;  %v527_v14 = vadd.f32 %v526_v13, %v267_v5 }
 0x2bb   :  { %651 = vtanh.f32 %v447_v10  ;;  %v485_v15 = vpop.f32.mrf.mxu0  ;;  %v528_v16 = vpop.f32.mrf.mxu1 }
 0x2bc   :  { %653 = vtanh.f32 %v484_v44  ;;  %v486_v17 = vadd.f32 %v485_v15, %v263_v8  ;;  %v529_v18 = vadd.f32 %v528_v16, %v271_v11 }
 0x2bd   :  { %655 = vtanh.f32 %v527_v14  ;;  %v487_v19 = vpop.f32.mrf.mxu0  ;;  %v530_v20 = vpop.f32.mrf.mxu1 }
 0x2be   :  { %657 = vtanh.f32 %v486_v17  ;;  %v488_v21 = vadd.f32 %v487_v19, %v259_v0  ;;  %v531_v22 = vadd.f32 %v530_v20, %v267_v5 }
 0x2bf   :  { %659 = vtanh.f32 %v529_v18  ;;  %v489_v23 = vpop.f32.mrf.mxu0  ;;  %v532_v24 = vpop.f32.mrf.mxu1 }
 0x2c0   :  { %661 = vtanh.f32 %v488_v21  ;;  %v490_v25 = vadd.f32 %v489_v23, %v263_v8  ;;  %v533_v26 = vadd.f32 %v532_v24, %v271_v11 }
 0x2c1   :  { %v638_v27 = vpop.eup %637  ;;  %663 = vtanh.f32 %v531_v22 }
 0x2c2   :  { %v640_v28 = vpop.eup %639  ;;  %551 = vst [vmem:[%s864_s4] sm:$0xff] %v638_v27  ;;  %665 = vtanh.f32 %v490_v25 }
 0x2c3   :  { %v642_v29 = vpop.eup %641  ;;  %553 = vst [vmem:[%s864_s4 + $0x10] sm:$0xff] %v640_v28  ;;  %667 = vtanh.f32 %v533_v26 }
 0x2c4   :  { %v644_v30 = vpop.eup %643  ;;  %552 = vst [vmem:[%s864_s4 + $0x8] sm:$0xff] %v642_v29 }
 0x2c5   :  { %v646_v31 = vpop.eup %645  ;;  %554 = vst [vmem:[%s864_s4 + $0x18] sm:$0xff] %v644_v30 }
 0x2c6   :  { %v648_v32 = vpop.eup %647  ;;  %559 = vst [vmem:[%s864_s4 + $0x40] sm:$0xff] %v646_v31 }
 0x2c7   :  { %v650_v33 = vpop.eup %649  ;;  %561 = vst [vmem:[%s864_s4 + $0x50] sm:$0xff] %v648_v32 }
 0x2c8   :  { %v652_v38 = vpop.eup %651  ;;  %560 = vst [vmem:[%s864_s4 + $0x48] sm:$0xff] %v650_v33 }
 0x2c9   :  { %v654_v42 = vpop.eup %653  ;;  %562 = vst [vmem:[%s864_s4 + $0x58] sm:$0xff] %v652_v38 }
 0x2ca   :  { %v656_v43 = vpop.eup %655  ;;  %555 = vst [vmem:[%s864_s4 + $0x20] sm:$0xff] %v654_v42 }
 0x2cb   :  { %v658_v45 = vpop.eup %657  ;;  %557 = vst [vmem:[%s864_s4 + $0x30] sm:$0xff] %v656_v43 }
 0x2cc   :  { %v660_v46 = vpop.eup %659  ;;  %556 = vst [vmem:[%s864_s4 + $0x28] sm:$0xff] %v658_v45 }
 0x2cd   :  { %v662_v47 = vpop.eup %661  ;;  %558 = vst [vmem:[%s864_s4 + $0x38] sm:$0xff] %v660_v46 }
 0x2ce   :  { %v664_v34 = vpop.eup %663  ;;  %563 = vst [vmem:[%s864_s4 + $0x60] sm:$0xff] %v662_v47 }
 0x2cf   :  { %v666_v35 = vpop.eup %665  ;;  %565 = vst [vmem:[%s864_s4 + $0x70] sm:$0xff] %v664_v34 }
 0x2d0   :  { %v668_v36 = vpop.eup %667  ;;  %564 = vst [vmem:[%s864_s4 + $0x68] sm:$0xff] %v666_v35 }
 0x2d1   :  { %566 = vst [vmem:[%s864_s4 + $0x78] sm:$0xff] %v668_v36 }
 0x2d2   :  { %571 = vsyncpa [#allocation3], 1 }

</bundles_post_ra>
